<compile_context>
chip_gen: v7x
topology: tpu7x:2x2x1
jax: 0.10.0
libtpu: 0.0.40
codegen_flags: <defaults>
</compile_context>

<pallas_src>
import jax
import jax.numpy as jnp
from jax import lax
from jax.experimental import pallas as pl
from jax.experimental.pallas import tpu as pltpu

IN_FEATURES = 10
OUT_FEATURES = 2

# Batch rows per grid step. Batch is the lane axis -> must be a multiple of
# 128. Sized so the per-step DMA (~1.3 MiB of x^T) comfortably dominates the
# ~0.35 us per-grid-step overhead, while the double-buffered working set
# (~2.9 MiB) stays far inside VMEM on v5e/v6e/v7x.
_MAX_TILE_B = 32768
# Below this batch size, the fused XLA path beats the pallas_call launch cost.
_MIN_PALLAS_BATCH = 1024


def _linear_t_kernel(w_ref, b_ref, xt_ref, ot_ref):
    # w_ref:  [OUT, IN]       resident weight block (same block every step)
    # b_ref:  [OUT, 1]        resident bias block
    # xt_ref: [IN, TILE_B]    lane-dense batch tile of x^T
    # ot_ref: [OUT, TILE_B]   lane-dense batch tile of out^T
    x = xt_ref[...]
    w = w_ref[...]
    # Init accumulator from the bias once per tile (broadcast hoisted out of
    # the k-loop); accumulate in f32 on the VPU -- MXU skipped on purpose.
    acc = jnp.broadcast_to(b_ref[...], ot_ref.shape).astype(jnp.float32)
    for k in range(IN_FEATURES):            # static unroll: 10 FMAs per row
        acc = acc + w[:, k:k + 1] * x[k:k + 1, :]
    ot_ref[...] = acc.astype(ot_ref.dtype)


def _pick_tile_b(batch):
    """Largest 128-multiple tile covering `batch`, capped at _MAX_TILE_B."""
    return min(_MAX_TILE_B, pl.cdiv(batch, 128) * 128)


def shared_model_forward_pallas(x, weight, bias, *, tile_b=None):
    """x @ weight.T + bias via a lane-dense, batch-tiled Pallas kernel.

    x: [B, 10] f32, weight: [2, 10] f32 (PyTorch [out, in]), bias: [2] f32.
    Returns [B, 2] f32.
    """
    batch = x.shape[0]
    if tile_b is None:
        tile_b = _pick_tile_b(batch)
    assert tile_b % 128 == 0, "batch tile is the lane axis: multiple of 128"

    # Layout glue in plain JAX: transposed, lane-dense problem + padded batch
    # (padded tail columns are zero and sliced off after the kernel).
    xt = x.T                                     # [IN, B]
    b2 = bias.reshape(OUT_FEATURES, 1)           # [OUT, 1]
    padded = pl.cdiv(batch, tile_b) * tile_b
    if padded != batch:
        xt = jnp.pad(xt, ((0, 0), (0, padded - batch)))
    grid = (padded // tile_b,)

    out_t = pl.pallas_call(
        _linear_t_kernel,
        out_shape=jax.ShapeDtypeStruct((OUT_FEATURES, padded), x.dtype),
        grid=grid,
        in_specs=[
            pl.BlockSpec((OUT_FEATURES, IN_FEATURES), lambda i: (0, 0)),  # W
            pl.BlockSpec((OUT_FEATURES, 1), lambda i: (0, 0)),            # b
            pl.BlockSpec((IN_FEATURES, tile_b), lambda i: (0, i)),        # x^T
        ],
        out_specs=pl.BlockSpec((OUT_FEATURES, tile_b), lambda i: (0, i)),
        compiler_params=pltpu.CompilerParams(
            # Independent batch steps: lets v7x shard across its 2 TCs.
            dimension_semantics=("parallel",),
        ),
        cost_estimate=pl.CostEstimate(
            flops=2 * padded * IN_FEATURES * OUT_FEATURES,
            transcendentals=0,
            bytes_accessed=4 * (padded * IN_FEATURES + padded * OUT_FEATURES
                                + IN_FEATURES * OUT_FEATURES + OUT_FEATURES),
        ),
    )(weight, b2, xt)

    return out_t[:, :batch].T                    # back to [B, OUT]


def shared_model_forward(x, weight, bias, *, tile_b=None,
                         min_pallas_batch=_MIN_PALLAS_BATCH):
    """SharedModel.forward equivalent. Dispatches tiny batches to plain XLA."""
    if x.shape[0] < min_pallas_batch:
        return x @ weight.T + bias
    return shared_model_forward_pallas(x, weight, bias, tile_b=tile_b)


if __name__ == "__main__":
    key = jax.random.PRNGKey(0)
    kx1, kx2, kw, kb = jax.random.split(key, 4)

    # nn.Linear(10, 2)-style deterministic init:
    # uniform in [-1/sqrt(in_features), 1/sqrt(in_features)].
    bound = 1.0 / (IN_FEATURES ** 0.5)
    weight = jax.random.uniform(
        kw, (OUT_FEATURES, IN_FEATURES), jnp.float32, -bound, bound)
    bias = jax.random.uniform(kb, (OUT_FEATURES,), jnp.float32, -bound, bound)

    # Pallas path: forced through the kernel with tile_b=128, exercising a
    # multi-step grid and the padded tail (batch 300 -> padded 384 rows).
    x_big = jax.random.normal(kx1, (300, IN_FEATURES), jnp.float32)
    out_big = jax.block_until_ready(
        shared_model_forward_pallas(x_big, weight, bias, tile_b=128))
    ref_big = jnp.dot(x_big, weight.T, precision=lax.Precision.HIGHEST) + bias
    assert out_big.shape == (300, OUT_FEATURES)
    assert jnp.allclose(out_big, ref_big, atol=1e-5, rtol=1e-5)

    # Default tile selection path (single grid step, batch padded to 384).
    out_def = jax.block_until_ready(
        shared_model_forward_pallas(x_big, weight, bias))
    assert jnp.allclose(out_def, ref_big, atol=1e-5, rtol=1e-5)

    # Tiny-batch dispatch path (bypasses Pallas; launch overhead dominates).
    x_small = jax.random.normal(kx2, (8, IN_FEATURES), jnp.float32)
    out_small = jax.block_until_ready(
        shared_model_forward(x_small, weight, bias))
    ref_small = x_small @ weight.T + bias
    assert out_small.shape == (8, OUT_FEATURES)
    assert jnp.allclose(out_small, ref_small, atol=1e-5, rtol=1e-5)

    print("KERNEL_OK")
</pallas_src>

<mosaic_0001>
module attributes {stable_mosaic.version = 11 : i64} {
  func.func @_linear_t_kernel(%arg0: i32, %arg1: memref<2x10xf32, #tpu.memory_space<vmem>>, %arg2: memref<2x1xf32, #tpu.memory_space<vmem>>, %arg3: memref<10x128xf32, #tpu.memory_space<vmem>>, %arg4: memref<2x128xf32, #tpu.memory_space<vmem>>) attributes {dimension_semantics = [#tpu.dimension_semantics<parallel>], iteration_bounds = array<i64: 3>, scalar_prefetch = 0 : i64, scratch_operands = 0 : i64, tpu.core_type = #tpu.core_type<tc>, window_params = [{pipeline_mode = #tpu.pipeline_mode<synchronous>, transform_indices = @transform_0, window_bounds = array<i64: 2, 10>}, {pipeline_mode = #tpu.pipeline_mode<synchronous>, transform_indices = @transform_1, window_bounds = array<i64: 2, 1>}, {transform_indices = @transform_2, window_bounds = array<i64: 10, 128>}, {transform_indices = @transform_3, window_bounds = array<i64: 2, 128>}]} {
    %c0 = arith.constant 0 : index
    %c0_0 = arith.constant 0 : index
    %0 = vector.load %arg3[%c0, %c0_0] : memref<10x128xf32, #tpu.memory_space<vmem>>, vector<10x128xf32>
    %c0_1 = arith.constant 0 : index
    %c0_2 = arith.constant 0 : index
    %1 = vector.load %arg1[%c0_1, %c0_2] : memref<2x10xf32, #tpu.memory_space<vmem>>, vector<2x10xf32>
    %c0_3 = arith.constant 0 : index
    %c0_4 = arith.constant 0 : index
    %2 = vector.load %arg2[%c0_3, %c0_4] : memref<2x1xf32, #tpu.memory_space<vmem>>, vector<2x1xf32>
    %3 = vector.shape_cast %2 : vector<2x1xf32> to vector<2x1xf32>
    %4 = vector.broadcast %3 : vector<2x1xf32> to vector<2x128xf32>
    %5 = vector.extract_strided_slice %1 {offsets = [0, 0], sizes = [2, 1], strides = [1, 1]} : vector<2x10xf32> to vector<2x1xf32>
    %6 = vector.extract_strided_slice %0 {offsets = [0, 0], sizes = [1, 128], strides = [1, 1]} : vector<10x128xf32> to vector<1x128xf32>
    %7 = vector.broadcast %5 : vector<2x1xf32> to vector<2x128xf32>
    %8 = vector.broadcast %6 : vector<1x128xf32> to vector<2x128xf32>
    %9 = arith.mulf %7, %8 : vector<2x128xf32>
    %10 = arith.addf %4, %9 : vector<2x128xf32>
    %11 = vector.extract_strided_slice %1 {offsets = [0, 1], sizes = [2, 1], strides = [1, 1]} : vector<2x10xf32> to vector<2x1xf32>
    %12 = vector.extract_strided_slice %0 {offsets = [1, 0], sizes = [1, 128], strides = [1, 1]} : vector<10x128xf32> to vector<1x128xf32>
    %13 = vector.broadcast %11 : vector<2x1xf32> to vector<2x128xf32>
    %14 = vector.broadcast %12 : vector<1x128xf32> to vector<2x128xf32>
    %15 = arith.mulf %13, %14 : vector<2x128xf32>
    %16 = arith.addf %10, %15 : vector<2x128xf32>
    %17 = vector.extract_strided_slice %1 {offsets = [0, 2], sizes = [2, 1], strides = [1, 1]} : vector<2x10xf32> to vector<2x1xf32>
    %18 = vector.extract_strided_slice %0 {offsets = [2, 0], sizes = [1, 128], strides = [1, 1]} : vector<10x128xf32> to vector<1x128xf32>
    %19 = vector.broadcast %17 : vector<2x1xf32> to vector<2x128xf32>
    %20 = vector.broadcast %18 : vector<1x128xf32> to vector<2x128xf32>
    %21 = arith.mulf %19, %20 : vector<2x128xf32>
    %22 = arith.addf %16, %21 : vector<2x128xf32>
    %23 = vector.extract_strided_slice %1 {offsets = [0, 3], sizes = [2, 1], strides = [1, 1]} : vector<2x10xf32> to vector<2x1xf32>
    %24 = vector.extract_strided_slice %0 {offsets = [3, 0], sizes = [1, 128], strides = [1, 1]} : vector<10x128xf32> to vector<1x128xf32>
    %25 = vector.broadcast %23 : vector<2x1xf32> to vector<2x128xf32>
    %26 = vector.broadcast %24 : vector<1x128xf32> to vector<2x128xf32>
    %27 = arith.mulf %25, %26 : vector<2x128xf32>
    %28 = arith.addf %22, %27 : vector<2x128xf32>
    %29 = vector.extract_strided_slice %1 {offsets = [0, 4], sizes = [2, 1], strides = [1, 1]} : vector<2x10xf32> to vector<2x1xf32>
    %30 = vector.extract_strided_slice %0 {offsets = [4, 0], sizes = [1, 128], strides = [1, 1]} : vector<10x128xf32> to vector<1x128xf32>
    %31 = vector.broadcast %29 : vector<2x1xf32> to vector<2x128xf32>
    %32 = vector.broadcast %30 : vector<1x128xf32> to vector<2x128xf32>
    %33 = arith.mulf %31, %32 : vector<2x128xf32>
    %34 = arith.addf %28, %33 : vector<2x128xf32>
    %35 = vector.extract_strided_slice %1 {offsets = [0, 5], sizes = [2, 1], strides = [1, 1]} : vector<2x10xf32> to vector<2x1xf32>
    %36 = vector.extract_strided_slice %0 {offsets = [5, 0], sizes = [1, 128], strides = [1, 1]} : vector<10x128xf32> to vector<1x128xf32>
    %37 = vector.broadcast %35 : vector<2x1xf32> to vector<2x128xf32>
    %38 = vector.broadcast %36 : vector<1x128xf32> to vector<2x128xf32>
    %39 = arith.mulf %37, %38 : vector<2x128xf32>
    %40 = arith.addf %34, %39 : vector<2x128xf32>
    %41 = vector.extract_strided_slice %1 {offsets = [0, 6], sizes = [2, 1], strides = [1, 1]} : vector<2x10xf32> to vector<2x1xf32>
    %42 = vector.extract_strided_slice %0 {offsets = [6, 0], sizes = [1, 128], strides = [1, 1]} : vector<10x128xf32> to vector<1x128xf32>
    %43 = vector.broadcast %41 : vector<2x1xf32> to vector<2x128xf32>
    %44 = vector.broadcast %42 : vector<1x128xf32> to vector<2x128xf32>
    %45 = arith.mulf %43, %44 : vector<2x128xf32>
    %46 = arith.addf %40, %45 : vector<2x128xf32>
    %47 = vector.extract_strided_slice %1 {offsets = [0, 7], sizes = [2, 1], strides = [1, 1]} : vector<2x10xf32> to vector<2x1xf32>
    %48 = vector.extract_strided_slice %0 {offsets = [7, 0], sizes = [1, 128], strides = [1, 1]} : vector<10x128xf32> to vector<1x128xf32>
    %49 = vector.broadcast %47 : vector<2x1xf32> to vector<2x128xf32>
    %50 = vector.broadcast %48 : vector<1x128xf32> to vector<2x128xf32>
    %51 = arith.mulf %49, %50 : vector<2x128xf32>
    %52 = arith.addf %46, %51 : vector<2x128xf32>
    %53 = vector.extract_strided_slice %1 {offsets = [0, 8], sizes = [2, 1], strides = [1, 1]} : vector<2x10xf32> to vector<2x1xf32>
    %54 = vector.extract_strided_slice %0 {offsets = [8, 0], sizes = [1, 128], strides = [1, 1]} : vector<10x128xf32> to vector<1x128xf32>
    %55 = vector.broadcast %53 : vector<2x1xf32> to vector<2x128xf32>
    %56 = vector.broadcast %54 : vector<1x128xf32> to vector<2x128xf32>
    %57 = arith.mulf %55, %56 : vector<2x128xf32>
    %58 = arith.addf %52, %57 : vector<2x128xf32>
    %59 = vector.extract_strided_slice %1 {offsets = [0, 9], sizes = [2, 1], strides = [1, 1]} : vector<2x10xf32> to vector<2x1xf32>
    %60 = vector.extract_strided_slice %0 {offsets = [9, 0], sizes = [1, 128], strides = [1, 1]} : vector<10x128xf32> to vector<1x128xf32>
    %61 = vector.broadcast %59 : vector<2x1xf32> to vector<2x128xf32>
    %62 = vector.broadcast %60 : vector<1x128xf32> to vector<2x128xf32>
    %63 = arith.mulf %61, %62 : vector<2x128xf32>
    %64 = arith.addf %58, %63 : vector<2x128xf32>
    %c0_5 = arith.constant 0 : index
    %c0_6 = arith.constant 0 : index
    %65 = vector.load %arg4[%c0_5, %c0_6] : memref<2x128xf32, #tpu.memory_space<vmem>>, vector<2x128xf32>
    tpu.vector_store %arg4[%c0_5, %c0_6], %64 {strides = array<i32>} : memref<2x128xf32, #tpu.memory_space<vmem>>, vector<2x128xf32>,
    return
  }
  func.func @transform_0(%arg0: i32) -> (i32, i32) {
    %c0_i32 = arith.constant 0 : i32
    %c0_i32_0 = arith.constant 0 : i32
    %c0_i32_1 = arith.constant 0 : i32
    return %c0_i32, %c0_i32_0 : i32, i32
  }
  func.func @transform_1(%arg0: i32) -> (i32, i32) {
    %c0_i32 = arith.constant 0 : i32
    %c0_i32_0 = arith.constant 0 : i32
    %c0_i32_1 = arith.constant 0 : i32
    return %c0_i32, %c0_i32_0 : i32, i32
  }
  func.func @transform_2(%arg0: i32) -> (i32, i32) {
    %c0_i32 = arith.constant 0 : i32
    %c0_i32_0 = arith.constant 0 : i32
    return %c0_i32, %arg0 : i32, i32
  }
  func.func @transform_3(%arg0: i32) -> (i32, i32) {
    %c0_i32 = arith.constant 0 : i32
    %c0_i32_0 = arith.constant 0 : i32
    return %c0_i32, %arg0 : i32, i32
  }
}

</mosaic_0001>

<bundles_post_ra>
// kernel: tpu_custom_call.1
= control target key start
LH: loop header
LB: loop body
LE: loop exit
PB: predicated region body
PF: predicated region fallthrough
CT: control target
= control target key end

     0   :  { %8 = vsyncpa [#allocation3], 0  ;;  %s768_s0 = inlined_call_operand.vmem [shape: f32[2,10], index: 0, kind: input, shape index: {}]   ;;  %s769_s1 = inlined_call_operand.vmem [shape: f32[2,1], index: 1, kind: input, shape index: {}]   ;;  %s770_s2 = inlined_call_operand.hbm [shape: f32[10,384], index: 2, kind: input, shape index: {}]   ;;  %s771_s3 = inlined_call_operand.hbm [shape: f32[2,384], index: 3, kind: output, shape index: {}]  }
   0x1   :  { %10 = vsyncpa [#allocation3 + $0x1], 0 }
   0x2   :  { %11 = vsyncpa [#allocation4], 0 }
   0x3   :  { %13 = vsyncpa [#allocation4 + $0x1], 0  ;;  %s597_s12 = smov 0   ;;  %s599_s13 = smov 0  }
   0x4   :  { %s601_s14 = smov 0   ;;  %s603_s15 = smov 0  }
   0x5 LB: > { %s618_s16 = sadd.s32 4294967295, %s560_s15   ;;  %s383_s17 = sadd.s32 4294967294, %s560_s15   ;;  %s560_s15 = sphi %s603_s15, %s784_s15   ;;  %s556_s14 = sphi %s601_s14, %s783_s14   ;;  %s552_s13 = sphi %s599_s13, %s782_s13   ;;  %s548_s12 = sphi %s597_s12, %s781_s12  }
   0x6   : > { %s622_s18 = sadd.s32 1, %s560_s15   ;;  %s68_s19 = sadd.s32 1, %s556_s14 }
   0x7   : > { %s65_s20 = ssub.s32 %s560_s15, %s622_s18  ;;  %p75_p0 = scmp.ne.s32.totalorder %s556_s14, %s552_s13 }
   0x8   : > { %p66_p1 = scmp.eq.s32.totalorder %s65_s20, 0  ;;  %p76_p2 = scmp.eq.s32.totalorder %s560_s15, 0 }
   0x9   : > { %p81_p3 = scmp.ne.s32.totalorder %s552_s13, %s548_s12  ;;  %p82_p4 = scmp.eq.s32.totalorder %s618_s16, 0 }
   0xa   : > { %s634_s21 = scalar_select %p66_p1, %s556_s14, %s68_s19  }
   0xb   : > { %p636_p5 = por %p76_p2, %p75_p0  ;;  %p640_p6 = por %p82_p4, %p81_p3 }
   0xc   : > { %p105_p7 = scmp.eq.s32.totalorder %s618_s16, 2  ;;  %p111_p8 = scmp.eq.s32.totalorder %s383_s17, 2 }
   0xd   : > { %p407_p9 = scmp.lt.s32.totalorder %s560_s15, 3  ;;  %s137_s26 = sand.u32 1, %s556_s14  }
   0xe   : > { %p646_p10 = por %p105_p7, %p75_p0  ;;  %p650_p11 = por %p111_p8, %p81_p3 }
   0xf   : > { %s387_s27 = sshll.u32 %s560_s15, 7  ;;  %s386_s28 = sshll.u32 %s137_s26, 4 }
  0x10   : > { %s775_s24 = scalar_select %p646_p10, 1, 0 }
  0x11   : > { %s776_s25 = scalar_select %p650_p11, 1, 0 }
  0x12   : > { %s659_s4 = scalar_lea.hbm %s770_s2, %s387_s27  ;;  %s141_s5 = scalar_lea.vmem [#allocation2], %s386_s28 }
  0x13   : > { %s147_s6 = sshll.u32 %s141_s5, 4  ;;  %p663_p12 = pnand %p407_p9, %p636_p5  ;;  %s667_s6 = int_to_ptr.vmem [resolvable:$true] %s147_s6 }
  0x14   : > { %s670_s8 = scalar_lea.sflag [#allocation3], %s137_s26  ;;  %s464_s9 = scalar_lea.hbm %s659_s4, 256 }
  0x15   : > { %p465_p0 = scmp.ne.s32.totalorder %s659_s4, %s464_s9  ;;  %p466_p1 = pneg %p663_p12 }
  0x16   : > { %s469_s17 = scalar_lea.hbm %s770_s2, 768  ;;  %p470_p4 = scmp.lt.u32.totalorder %s659_s4, %s770_s2 }
  0x17   : > { %p467_p2 = pnand %p466_p1, %p465_p0  ;;  %p471_p5 = scmp.lt.u32.totalorder %s469_s17, %s464_s9 }
  0x18   : > { %p473_p8 = scmp.lt.u32.totalorder %s464_s9, %s659_s4 }
  0x19   : > { %p468_p3 = pneg %p467_p2  ;;  %p472_p7 = por %p471_p5, %p470_p4 }
  0x1b   : > { %p474_p9 = por %p473_p8, %p472_p7 }
  0x1d   : > { %p475_p13 = pnand %p474_p9, %p468_p3 }
  0x1f   : > { %478 = shalt.err (!%p475_p13)
}
  0x20   : > { %s479_s22 = scalar_lea.vmem %s667_s6, 256  ;;  %s562_s26 = smov [#allocation2]  }
  0x21   : > { %p480_p0 = scmp.ne.s32.totalorder %s667_s6, %s479_s22  ;;  %s484_s27 = sshll.u32 %s562_s26, 4  ;;  %s485_s27 = int_to_ptr.vmem [resolvable:$false] %s484_s27 }
  0x22   : > { %s486_s28 = scalar_lea.vmem %s485_s27, 512  ;;  %p487_p10 = scmp.lt.s32.totalorder %s667_s6, %s485_s27 }
  0x23   : > { %p482_p2 = pnand %p480_p0, %p466_p1  ;;  %p488_p4 = scmp.lt.s32.totalorder %s486_s28, %s479_s22 }
  0x25   : > { %p483_p11 = pneg %p482_p2  ;;  %p489_p5 = por %p488_p4, %p487_p10 }
  0x27   : > { %p490_p7 = pnand %p489_p5, %p483_p11 }
  0x29   : > { %493 = shalt.err (!%p490_p7)
}
  0x2a   : > { %s563_s29 = smov 384   ;;  %s564_s30 = smov 128  }
  0x2b   : > { %s565_s5 = smov 8   ;;  %p155_p13 = scmp.lt.s32.totalorder %s560_s15, 4 }
  0x2c   : > { %402 = dma.hbm_to_vmem [thread:$0]  (!%p663_p12), %s659_s4, 256, %s667_s6, %s670_s8, %s563_s29, %s564_s30, %s565_s5  }
  0x2d   : > { %p778_p1 = scmp.ge.s32.totalorder %s560_s15, 1 }
  0x2f   : > { %p156_p3 = pnand %p778_p1, %p155_p13 }
  0x30   : > { %s702_s9 = sand.u32 (!%p156_p3), 1, %s552_s13  }
  0x31   : > { %159 = sbr.rel (%p156_p3) target bundleno = 232 (0xe8), region = 32  ;;  %s389_s10 = sshll.u32 (!%p156_p3), %s702_s9, 4 }
  0x32   : > { %s162_s11 = scalar_lea.sflag (!%p156_p3), [#allocation3], %s702_s9  ;;  %s706_s17 = scalar_lea.vmem (!%p156_p3), [#allocation2], %s389_s10 }
  0x38   : > { %539 = dma.done.wait (%p640_p6), %s162_s11, 256  }
  0x39   : > { %541 = vsyncadd (%p640_p6), %s162_s11, 4294967040  ;;  %v566_v0 = vmov 1   ;;  %v567_v1 = vmov 0   ;;  %v190_v2 = vld [vmem:[%s768_s0] sm:$0x3]  ;;  %v568_v4 = vmov 2   ;;  %v202_v12 = vlaneseq }
  0x3a   : > { %455 = vset.pattern.permute.xlu1 %v566_v0  ;;  %454 = vset.pattern.permute.xlu0 %v567_v1  ;;  %v191_v3 = vld [vmem:[%s769_s1] sm:$0x3]  ;;  %v569_v5 = vmov 3   ;;  %v570_v6 = vmov 4   ;;  %v571_v7 = vmov 6   ;;  %v572_v8 = vmov 5  }
  0x3b   : > { %209 = vperm.xlu1 %455, %v190_v2   ;;  %199 = vperm.xlu0 %454, %v190_v2   ;;  %v573_v9 = vmov 9   ;;  %v574_v10 = vmov 7   ;;  %v575_v11 = vmov 8   ;;  %v203_v13 = vshrl.u32 %v202_v12, 7  ;;  %v188_v15 = vld [vmem:[%s706_s17] sm:$0xff]  ;;  %s390_s23 = sshll.u32 %s702_s9, 1 }
  0x3c   : > { %v189_v52 = vld [vmem:[%s706_s17 + $0x8] sm:$0x3]  ;;  %s392_s19 = sshll.u32 %s618_s16, 5  ;;  %s187_s20 = scalar_lea.vmem [#allocation5], %s390_s23 }
  0x3d   : > { %v204_v14 = vsub.s32 0, %v203_v13  ;;  %v214_v16 = vsub.s32 1, %v203_v13  ;;  %v224_v18 = vsub.s32 2, %v203_v13  ;;  %v234_v24 = vsub.s32 3, %v203_v13  ;;  %s313_s22 = sshll.u32 %s187_s20, 4  ;;  %s725_s28 = scalar_lea.hbm %s771_s3, %s392_s19  ;;  %s727_s22 = int_to_ptr.vmem [resolvable:$true] %s313_s22 }
  0x3e   : > { %v244_v26 = vsub.s32 4, %v203_v13  ;;  %v254_v34 = vsub.s32 5, %v203_v13  ;;  %v264_v39 = vsub.s32 6, %v203_v13  ;;  %v274_v44 = vsub.s32 7, %v203_v13  ;;  %s300_s29 = scalar_lea.sflag [#allocation4], %s702_s9  ;;  %s494_s30 = scalar_lea.vmem %s727_s22, 32 }
  0x3f   : > { %456 = vset.pattern.permute.xlu1 %v568_v4  ;;  %194 = vperm.xlu0 %454, %v191_v3   ;;  %v205_v17 = vrot.slane %v188_v15, %v204_v14  ;;  %v215_v21 = vrot.slane %v188_v15, %v214_v16  ;;  %v225_v23 = vrot.slane %v188_v15, %v224_v18  ;;  %p495_p6 = scmp.ne.s32.totalorder %s727_s22, %s494_s30  ;;  %p779_p10 = scmp.ne.s32.totalorder %s775_s24, 0 }
  0x40   : > { %219 = vperm.xlu1 %456, %v190_v2   ;;  %v235_v31 = vrot.slane %v188_v15, %v234_v24  ;;  %v245_v33 = vrot.slane %v188_v15, %v244_v26  ;;  %v255_v42 = vrot.slane %v188_v15, %v254_v34  ;;  %v265_v43 = vrot.slane %v188_v15, %v264_v39  ;;  %s576_s16 = smov [#allocation5]  }
  0x41   : > { %v275_v51 = vrot.slane %v188_v15, %v274_v44  ;;  %v285_v56 = vrot.slane %v189_v52, %v204_v14  ;;  %v295_v57 = vrot.slane %v189_v52, %v214_v16  ;;  %p496_p11 = pnand %p495_p6, %p779_p10  ;;  %s498_s5 = sshll.u32 %s576_s16, 4  ;;  %s499_s5 = int_to_ptr.vmem [resolvable:$false] %s498_s5 }
  0x42   : > { %s500_s10 = scalar_lea.vmem %s499_s5, 64  ;;  %p501_p8 = scmp.lt.s32.totalorder %s727_s22, %s499_s5 }
  0x43   : > { %457 = vset.pattern.permute.xlu0 %v569_v5  ;;  %p497_p12 = pneg %p496_p11  ;;  %p502_p9 = scmp.lt.s32.totalorder %s500_s10, %s494_s30 }
  0x44   : > { %458 = vset.pattern.permute.xlu1 %v570_v6  ;;  %229 = vperm.xlu0 %457, %v190_v2  }
  0x45   : > { %239 = vperm.xlu1 %458, %v190_v2   ;;  %p503_p0 = por %p502_p9, %p501_p8 }
  0x47   : > { %p504_p2 = pnand %p503_p0, %p497_p12 }
  0x48   : > { %460 = vset.pattern.permute.xlu0 %v571_v7 }
  0x49   : > { %459 = vset.pattern.permute.xlu1 %v572_v8  ;;  %259 = vperm.xlu0 %460, %v190_v2  }
  0x4a   : > { %249 = vperm.xlu1 %459, %v190_v2  }
  0x4d   : > { %463 = vset.pattern.permute.xlu0 %v573_v9 }
  0x4e   : > { %461 = vset.pattern.permute.xlu1 %v574_v10  ;;  %289 = vperm.xlu0 %463, %v190_v2  }
  0x4f   : > { %269 = vperm.xlu1 %461, %v190_v2  }
  0x53   : > { %462 = vset.pattern.permute.xlu1 %v575_v11 }
  0x54   : > { %279 = vperm.xlu1 %462, %v190_v2  }
  0xba   : > { %v210_v19 = vpop.permute.xlu1 %209  ;;  %v200_v20 = vpop.permute.xlu0 %199 }
  0xbb   : > { %v206_v22 = vmul.f32 %v205_v17, %v200_v20  ;;  %v216_v27 = vmul.f32 %v215_v21, %v210_v19 }
  0xbe   : > { %v195_v25 = vpop.permute.xlu0 %194 }
  0xbf   : > { %v207_v28 = vadd.f32 %v206_v22, %v195_v25  ;;  %v220_v29 = vpop.permute.xlu1 %219 }
  0xc0   : > { %v226_v30 = vmul.f32 %v225_v23, %v220_v29 }
  0xc1   : > { %v217_v32 = vadd.f32 %v216_v27, %v207_v28 }
  0xc3   : > { %v227_v35 = vadd.f32 %v226_v30, %v217_v32  ;;  %v230_v36 = vpop.permute.xlu0 %229 }
  0xc4   : > { %v236_v37 = vmul.f32 %v235_v31, %v230_v36  ;;  %v240_v38 = vpop.permute.xlu1 %239 }
  0xc5   : > { %v246_v41 = vmul.f32 %v245_v33, %v240_v38 }
  0xc6   : > { %v237_v40 = vadd.f32 %v236_v37, %v227_v35 }
  0xc8   : > { %v260_v46 = vpop.permute.xlu0 %259  ;;  %v247_v47 = vadd.f32 %v246_v41, %v237_v40 }
  0xc9   : > { %v250_v45 = vpop.permute.xlu1 %249  ;;  %v266_v50 = vmul.f32 %v265_v43, %v260_v46 }
  0xca   : > { %v256_v48 = vmul.f32 %v255_v42, %v250_v45 }
  0xcc   : > { %v257_v49 = vadd.f32 %v256_v48, %v247_v47 }
  0xcd   : > { %v290_v58 = vpop.permute.xlu0 %289 }
  0xce   : > { %v270_v53 = vpop.permute.xlu1 %269  ;;  %v267_v54 = vadd.f32 %v266_v50, %v257_v49  ;;  %v296_v62 = vmul.f32 %v295_v57, %v290_v58 }
  0xcf   : > { %v276_v55 = vmul.f32 %v275_v51, %v270_v53 }
  0xd1   : > { %v277_v60 = vadd.f32 %v276_v55, %v267_v54 }
  0xd3   : > { %v280_v59 = vpop.permute.xlu1 %279 }
  0xd4   : > { %v286_v61 = vmul.f32 %v285_v56, %v280_v59 }
  0xd6   : > { %v287_v63 = vadd.f32 %v286_v61, %v277_v60 }
  0xd8   : > { %v297_v0 = vadd.f32 %v296_v62, %v287_v63 }
  0xda   : > { %298 = vst [vmem:[%s187_s20] sm:$0x3] %v297_v0 }
  0xdb   : > { %507 = shalt.err (!%p504_p2)
}
  0xdc   : > { %s508_s9 = scalar_lea.hbm %s725_s28, 32  ;;  %s512_s4 = scalar_lea.hbm %s771_s3, 96 }
  0xdd   : > { %p509_p4 = scmp.ne.s32.totalorder %s725_s28, %s508_s9  ;;  %p513_p13 = scmp.lt.u32.totalorder %s725_s28, %s771_s3 }
  0xde   : > { %p514_p1 = scmp.lt.u32.totalorder %s512_s4, %s508_s9  ;;  %p516_p6 = scmp.lt.u32.totalorder %s508_s9, %s725_s28 }
  0xdf   : > { %p510_p5 = pnand %p509_p4, %p779_p10 }
  0xe0   : > { %p515_p3 = por %p514_p1, %p513_p13 }
  0xe1   : > { %p511_p7 = pneg %p510_p5 }
  0xe2   : > { %p517_p11 = por %p516_p6, %p515_p3 }
  0xe4   : > { %p518_p12 = pnand %p517_p11, %p511_p7 }
  0xe6   : > { %521 = shalt.err (!%p518_p12)
}
  0xe7   : > { %397 = dma.vmem_to_hbm [thread:$0]  (%p779_p10), %s727_s22, 32, %s725_s28, %s300_s29  }
  0xe8 PF: > { %p408_p8 = scmp.ge.s32.totalorder %s560_s15, 2  ;;  %s325_s8 = sand.u32 1, %s548_s12  }
  0xe9   : > { %p780_p9 = scmp.ne.s32.totalorder %s776_s25, 0  ;;  %s326_s23 = scalar_lea.sflag [#allocation4], %s325_s8 }
  0xeb   : > { %p404_p0 = pnand %p408_p8, %p780_p9 }
  0xed   : > { %543 = dma.done.wait (!%p404_p0), %s326_s23, 32  }
  0xee   : > { %545 = vsyncadd (!%p404_p0), %s326_s23, 4294967264  ;;  %p16_p2 = scmp.ge.s32.totalorder %s622_s18, 5   ;;  %s781_s12 = smov %s552_s13 }
  0xef   : > { %s782_s13 = smov %s556_s14  ;;  %s783_s14 = smov %s634_s21 }
  0xf0   : > { %s784_s15 = smov %s622_s18  ;;  %18 = sbr.rel (!%p16_p2) target bundleno = 5 (0x5), region = 77 }
  0xf7   :  { %331 = vsyncpa [#allocation3], 1 }
  0xf8   :  { %333 = vsyncpa [#allocation3 + $0x1], 1 }
  0xf9   :  { %334 = vsyncpa [#allocation4], 1 }
  0xfa   :  { %336 = vsyncpa [#allocation4 + $0x1], 1 }

</bundles_post_ra>
